<compile_context>
chip_gen: v5e
topology: v5e:2x2
jax: 0.10.0
libtpu: 0.0.40
codegen_flags: <defaults>
</compile_context>

<pallas_src>
import math
import functools

import jax
import jax.numpy as jnp
from jax.experimental import pallas as pl
from jax.experimental.pallas import tpu as pltpu


# ------------------------------ helpers --------------------------------------

def _round_up(x, m):
    return ((x + m - 1) // m) * m


def _make_layout(n_obs, hid, n_act, num_hid_layers):
    """Static row layout of the packed parameter slab."""
    # C: carried activation width; needs 2*hid real lanes + 1 spare "ones" lane.
    C = _round_up(2 * hid + 1, 128)
    OUT_ROWS = _round_up(2 * n_act + 1, 8)

    layout = {}
    row = 0
    layout["w0"] = row                     # (n_obs, C) fused first-layer weight
    row += _round_up(n_obs, 8)
    layout["w_hid"] = []                   # (C, C) block-diag weights, bias in row C-1
    for _ in range(num_hid_layers - 1):
        layout["w_hid"].append(row)
        row += C
    layout["w_head"] = row                 # (OUT_ROWS, C) transposed fused head
    row += OUT_ROWS
    layout["b0"] = row                     # (1, C) first-layer fused bias row
    row += 1

    R = _round_up(row, 8)
    return layout, R, C, OUT_ROWS


def _pack_slab(params, layout, R, C, OUT_ROWS, n_obs, hid, n_act, num_hid_layers):
    """Pack all parameters into one (R, C) f32 slab (static slices, traced)."""
    slab = jnp.zeros((R, C), jnp.float32)
    f32 = lambda a: a.astype(jnp.float32)

    # ---- fused first layer: cols [0:hid) action branch, [hid:2hid) value branch
    r = layout["w0"]
    slab = slab.at[r:r + n_obs, 0:hid].set(f32(params["act_ws"][0]))
    slab = slab.at[r:r + n_obs, hid:2 * hid].set(f32(params["val_ws"][0]))
    rb = layout["b0"]
    slab = slab.at[rb, 0:hid].set(f32(params["act_bs"][0]).reshape(-1))
    slab = slab.at[rb, hid:2 * hid].set(f32(params["val_bs"][0]).reshape(-1))

    # ---- block-diagonal hidden layers, bias folded into row C-1 (ones-lane)
    for i in range(num_hid_layers - 1):
        r = layout["w_hid"][i]
        slab = slab.at[r:r + hid, 0:hid].set(f32(params["act_ws"][i + 1]))
        slab = slab.at[r + hid:r + 2 * hid, hid:2 * hid].set(f32(params["val_ws"][i + 1]))
        slab = slab.at[r + C - 1, 0:hid].set(f32(params["act_bs"][i + 1]).reshape(-1))
        slab = slab.at[r + C - 1, hid:2 * hid].set(f32(params["val_bs"][i + 1]).reshape(-1))

    # ---- fused transposed head: rows = output features, col C-1 = bias lane
    r = layout["w_head"]
    # act means: rows [0:n_act), weights from the action branch lanes [0:hid)
    slab = slab.at[r:r + n_act, 0:hid].set(f32(params["fc_act_w"]).T)
    slab = slab.at[r:r + n_act, C - 1].set(f32(params["fc_act_b"]).reshape(-1))
    # act_log_stds: rows [n_act:2n_act), zero weights + log_std in the bias lane
    slab = slab.at[r + n_act:r + 2 * n_act, C - 1].set(
        f32(params["act_log_stds"]).reshape(-1))
    # value: row 2*n_act, weights from the value branch lanes [hid:2hid)
    slab = slab.at[r + 2 * n_act, hid:2 * hid].set(f32(params["fc_value_w"]).reshape(-1))
    slab = slab.at[r + 2 * n_act, C - 1].set(f32(params["fc_value_b"]).reshape(()))
    return slab


# ----------------------------- Pallas kernel ---------------------------------

def _mlp_policy_kernel(layout, n_act, x_ref, slab_ref, out_ref):
    """One batch block of the whole policy forward.

    x_ref    : (Bt, n_obs)       observation block
    slab_ref : (R, C)            packed params (VMEM-resident across the grid)
    out_ref  : (OUT_ROWS, Bt)    transposed lane-dense output block
    """
    x = x_ref[...]
    n_obs = x.shape[1]
    C = slab_ref.shape[1]
    out_rows = out_ref.shape[0]

    # Constant one-hot row: lane C-1 = 1.0.  The carried activation's pad lanes
    # (and lane C-1 in particular) are exactly zero, so `h + bias_lane` feeds a
    # 1.0 into the bias row of the next weight block.
    bias_lane = (jax.lax.broadcasted_iota(jnp.int32, (1, C), 1) == (C - 1)
                 ).astype(jnp.float32)

    r0 = layout["w0"]
    rb0 = layout["b0"]
    rh = layout["w_head"]

    # ---- fused first hidden layer (both branches share x) ----
    h = jnp.tanh(
        jnp.dot(x, slab_ref[r0:r0 + n_obs, :], preferred_element_type=jnp.float32)
        + slab_ref[rb0:rb0 + 1, :])

    # ---- remaining hidden layers: one block-diagonal matmul per layer ----
    for r in layout["w_hid"]:
        h = jnp.tanh(
            jnp.dot(h + bias_lane, slab_ref[r:r + C, :],
                    preferred_element_type=jnp.float32))

    # ---- fused head: (OUT_ROWS, C) @ (Bt, C)^T -> (OUT_ROWS, Bt), written
    #      directly to the transposed output block.
    res = jax.lax.dot_general(
        slab_ref[rh:rh + out_rows, :], h + bias_lane,
        dimension_numbers=(((1,), (1,)), ((), ())),
        preferred_element_type=jnp.float32)
    row_idx = jax.lax.broadcasted_iota(jnp.int32, res.shape, 0)
    # tanh only on the act-mean rows; log_std / value / pad rows pass through.
    out_ref[...] = jnp.where(row_idx < n_act, jnp.tanh(res), res)


# ----------------------------- parameter setup --------------------------------

def init_mlp_policy_params(key, n_obs, n_act, hid_size, num_hid_layers):
    """Deterministic synthetic init mirroring init_weights_fc (std*sqrt(2/(fan_in+fan_out)))."""

    def linear(key, n_in, n_out, std):
        kw, kb = jax.random.split(key)
        w = jax.random.normal(kw, (n_in, n_out), jnp.float32) * (
            std * math.sqrt(2.0 / (n_in + n_out))
        )
        # PyTorch default bias init is uniform; we pick a small deterministic one.
        b = jax.random.uniform(
            kb, (1, n_out), jnp.float32, -1.0, 1.0
        ) / math.sqrt(n_in)
        return w, b

    params = {}
    keys = jax.random.split(key, 2 * num_hid_layers + 2)
    k_idx = 0

    act_ws, act_bs = [], []
    n_in = n_obs
    for _ in range(num_hid_layers):
        w, b = linear(keys[k_idx], n_in, hid_size, 1.0)
        k_idx += 1
        act_ws.append(w)
        act_bs.append(b)
        n_in = hid_size
    fc_act_w, fc_act_b = linear(keys[k_idx], hid_size, n_act, 0.01)
    k_idx += 1

    val_ws, val_bs = [], []
    n_in = n_obs
    for _ in range(num_hid_layers):
        w, b = linear(keys[k_idx], n_in, hid_size, 1.0)
        k_idx += 1
        val_ws.append(w)
        val_bs.append(b)
        n_in = hid_size
    fc_value_w, fc_value_b = linear(keys[k_idx], hid_size, 1, 1.0)
    k_idx += 1

    params["act_ws"] = act_ws
    params["act_bs"] = act_bs
    params["fc_act_w"] = fc_act_w
    params["fc_act_b"] = fc_act_b
    params["val_ws"] = val_ws
    params["val_bs"] = val_bs
    params["fc_value_w"] = fc_value_w
    params["fc_value_b"] = fc_value_b
    # var = zeros([n_act])  -> act_log_stds
    params["act_log_stds"] = jnp.zeros((1, n_act), jnp.float32)
    return params


# ------------------------------- wrapper --------------------------------------

_BLOCK_CAP = 2048  # batch-block row cap (sweepable); well under VMEM limits here.


@functools.partial(jax.jit, static_argnames=("num_hid_layers",))
def mlp_policy_forward(x, params, num_hid_layers):
    B, n_obs = x.shape
    hid = params["fc_act_w"].shape[0]
    n_act = params["fc_act_w"].shape[1]
    L = num_hid_layers

    layout, R, C, OUT_ROWS = _make_layout(n_obs, hid, n_act, L)
    slab = _pack_slab(params, layout, R, C, OUT_ROWS, n_obs, hid, n_act, L)

    # ---- batch blocking ----
    # Small batches: one block (equal to the full array -> no (8,128) constraint,
    # no padding).  Larger batches: at least 2 blocks so both v7x TensorCores get
    # work, blocks are multiples of 128 lanes (lane-dense transposed output) and
    # capped at _BLOCK_CAP rows.
    b_pad = _round_up(B, 8)
    if b_pad <= 512:
        block_b = b_pad
    else:
        n_blocks = max(2, pl.cdiv(b_pad, _BLOCK_CAP))
        block_b = _round_up(pl.cdiv(b_pad, n_blocks), 128)
        b_pad = _round_up(b_pad, block_b)
    if b_pad != B:
        # TODO(synk): could avoid this copy entirely with masked edge blocks;
        # kept minimal (only alignment padding) for correctness/simplicity.
        x = jnp.pad(x, ((0, b_pad - B), (0, 0)))
    grid = (b_pad // block_b,)

    flops = 2 * b_pad * (n_obs * C + (L - 1) * C * C + C * OUT_ROWS)
    transcendentals = b_pad * (L * C + OUT_ROWS)
    bytes_accessed = 4 * (b_pad * n_obs + R * C + OUT_ROWS * b_pad)

    # TODO(synk): optional bf16 matmul inputs (f32 accumulation) for MXU-bound
    # cases on v6e; kept f32 to preserve the 1e-5 reference tolerance.
    out = pl.pallas_call(
        functools.partial(_mlp_policy_kernel, layout, n_act),
        out_shape=jax.ShapeDtypeStruct((OUT_ROWS, b_pad), jnp.float32),
        grid=grid,
        in_specs=[
            pl.BlockSpec((block_b, n_obs), lambda i: (i, 0)),
            pl.BlockSpec((R, C), lambda i: (0, 0)),   # params stay VMEM-resident
        ],
        out_specs=pl.BlockSpec((OUT_ROWS, block_b), lambda i: (0, i)),
        compiler_params=pltpu.CompilerParams(
            dimension_semantics=("parallel",),
            vmem_limit_bytes=32 * 1024 * 1024),
        cost_estimate=pl.CostEstimate(
            flops=flops,
            transcendentals=transcendentals,
            bytes_accessed=bytes_accessed),
    )(x, slab)

    # Output slab rows: [0:n_act) means, [n_act:2n_act) log_stds, 2n_act value.
    act_means = out[0:n_act, :B].T
    act_log_stds = out[n_act:2 * n_act, :B].T
    value = out[2 * n_act, :B]            # .view(-1) in the torch module
    return act_means, act_log_stds, value


# ------------------------------ reference -------------------------------------

def mlp_policy_reference(x, params):
    h = x
    for w, b in zip(params["act_ws"], params["act_bs"]):
        h = jnp.tanh(h @ w + b)
    act_means = jnp.tanh(h @ params["fc_act_w"] + params["fc_act_b"])

    h = x
    for w, b in zip(params["val_ws"], params["val_bs"]):
        h = jnp.tanh(h @ w + b)
    value = (h @ params["fc_value_w"] + params["fc_value_b"]).reshape(-1)

    act_log_stds = act_means * 0.0 + params["act_log_stds"]
    return act_means, act_log_stds, value


# -------------------------------- main ----------------------------------------

if __name__ == "__main__":
    # Small shapes consistent with the module: ob_space dim 16, ac_space dim 4.
    B = 8
    N_OBS = 16
    N_ACT = 4
    HID = 32
    NUM_HID_LAYERS = 2

    key = jax.random.PRNGKey(0)
    k_x, k_p = jax.random.split(key)

    x = jax.random.normal(k_x, (B, N_OBS), jnp.float32)
    params = init_mlp_policy_params(k_p, N_OBS, N_ACT, HID, NUM_HID_LAYERS)

    act_means, act_log_stds, value = mlp_policy_forward(
        x, params, num_hid_layers=NUM_HID_LAYERS
    )
    jax.block_until_ready((act_means, act_log_stds, value))

    # Sanity check against a pure-JAX reference of the same math.
    ref_means, ref_log_stds, ref_value = mlp_policy_reference(x, params)
    assert act_means.shape == (B, N_ACT)
    assert act_log_stds.shape == (B, N_ACT)
    assert value.shape == (B,)
    assert jnp.allclose(act_means, ref_means, atol=1e-5, rtol=1e-5)
    assert jnp.allclose(act_log_stds, ref_log_stds, atol=1e-5, rtol=1e-5)
    assert jnp.allclose(value, ref_value, atol=1e-5, rtol=1e-5)

    print("KERNEL_OK")
</pallas_src>

<mosaic_0001>
module attributes {stable_mosaic.version = 11 : i64} {
  func.func @_mlp_policy_kernel(%arg0: i32, %arg1: memref<8x16xf32, #tpu.memory_space<vmem>>, %arg2: memref<168x128xf32, #tpu.memory_space<vmem>>, %arg3: memref<16x8xf32, #tpu.memory_space<vmem>>) attributes {dimension_semantics = [#tpu.dimension_semantics<parallel>], iteration_bounds = array<i64: 1>, scalar_prefetch = 0 : i64, scratch_operands = 0 : i64, tpu.core_type = #tpu.core_type<tc>, window_params = [{transform_indices = @transform_0, window_bounds = array<i64: 8, 16>}, {pipeline_mode = #tpu.pipeline_mode<synchronous>, transform_indices = @transform_1, window_bounds = array<i64: 168, 128>}, {transform_indices = @transform_2, window_bounds = array<i64: 16, 8>}]} {
    %c0 = arith.constant 0 : index
    %c0_0 = arith.constant 0 : index
    %0 = vector.load %arg1[%c0, %c0_0] : memref<8x16xf32, #tpu.memory_space<vmem>>, vector<8x16xf32>
    %1 = tpu.iota {dimensions = array<i32: 1>} : vector<1x128xi32>
    %c127_i32 = arith.constant 127 : i32
    %2 = vector.broadcast %c127_i32 : i32 to vector<1x128xi32>
    %3 = arith.cmpi eq, %1, %2 : vector<1x128xi32>
    %4 = arith.extui %3 : vector<1x128xi1> to vector<1x128xi32>
    %5 = arith.sitofp %4 : vector<1x128xi32> to vector<1x128xf32>
    %c0_1 = arith.constant 0 : index
    %c0_2 = arith.constant 0 : index
    %6 = vector.load %arg2[%c0_1, %c0_2] : memref<168x128xf32, #tpu.memory_space<vmem>>, vector<16x128xf32>
    %cst = arith.constant dense<0.000000e+00> : vector<8x128xf32>
    %7 = tpu.matmul %0, %6, %cst {dimension_numbers = #tpu.dot_dimension_numbers<[1], [0], [0], [1], [0, 0, 1, 1], [], []>} : vector<8x16xf32>, vector<16x128xf32>, vector<8x128xf32> -> vector<8x128xf32>
    %c160 = arith.constant 160 : index
    %c0_3 = arith.constant 0 : index
    %8 = vector.load %arg2[%c160, %c0_3] : memref<168x128xf32, #tpu.memory_space<vmem>>, vector<1x128xf32>
    %9 = vector.broadcast %8 : vector<1x128xf32> to vector<8x128xf32>
    %10 = arith.addf %7, %9 : vector<8x128xf32>
    %11 = math.tanh %10 : vector<8x128xf32>
    %12 = vector.broadcast %5 : vector<1x128xf32> to vector<8x128xf32>
    %13 = arith.addf %11, %12 : vector<8x128xf32>
    %c16 = arith.constant 16 : index
    %c0_4 = arith.constant 0 : index
    %14 = vector.load %arg2[%c16, %c0_4] : memref<168x128xf32, #tpu.memory_space<vmem>>, vector<128x128xf32>
    %cst_5 = arith.constant dense<0.000000e+00> : vector<8x128xf32>
    %15 = tpu.matmul %13, %14, %cst_5 {dimension_numbers = #tpu.dot_dimension_numbers<[1], [0], [0], [1], [0, 0, 1, 1], [], []>} : vector<8x128xf32>, vector<128x128xf32>, vector<8x128xf32> -> vector<8x128xf32>
    %16 = math.tanh %15 : vector<8x128xf32>
    %c144 = arith.constant 144 : index
    %c0_6 = arith.constant 0 : index
    %17 = vector.load %arg2[%c144, %c0_6] : memref<168x128xf32, #tpu.memory_space<vmem>>, vector<16x128xf32>
    %18 = vector.broadcast %5 : vector<1x128xf32> to vector<8x128xf32>
    %19 = arith.addf %16, %18 : vector<8x128xf32>
    %cst_7 = arith.constant dense<0.000000e+00> : vector<16x8xf32>
    %20 = tpu.matmul %17, %19, %cst_7 {dimension_numbers = #tpu.dot_dimension_numbers<[1], [1], [0], [0], [0, 0, 1, 0], [], []>} : vector<16x128xf32>, vector<8x128xf32>, vector<16x8xf32> -> vector<16x8xf32>
    %21 = tpu.iota {dimensions = array<i32: 0>} : vector<16x8xi32>
    %c4_i32 = arith.constant 4 : i32
    %22 = vector.broadcast %c4_i32 : i32 to vector<16x8xi32>
    %23 = arith.cmpi slt, %21, %22 : vector<16x8xi32>
    %24 = math.tanh %20 : vector<16x8xf32>
    %25 = arith.select %23, %24, %20 : vector<16x8xi1>, vector<16x8xf32>
    %c0_8 = arith.constant 0 : index
    %c0_9 = arith.constant 0 : index
    %26 = vector.load %arg3[%c0_8, %c0_9] : memref<16x8xf32, #tpu.memory_space<vmem>>, vector<16x8xf32>
    tpu.vector_store %arg3[%c0_8, %c0_9], %25 {strides = array<i32>} : memref<16x8xf32, #tpu.memory_space<vmem>>, vector<16x8xf32>,
    return
  }
  func.func @transform_0(%arg0: i32) -> (i32, i32) {
    %c0_i32 = arith.constant 0 : i32
    %c0_i32_0 = arith.constant 0 : i32
    return %arg0, %c0_i32 : i32, i32
  }
  func.func @transform_1(%arg0: i32) -> (i32, i32) {
    %c0_i32 = arith.constant 0 : i32
    %c0_i32_0 = arith.constant 0 : i32
    %c0_i32_1 = arith.constant 0 : i32
    return %c0_i32, %c0_i32_0 : i32, i32
  }
  func.func @transform_2(%arg0: i32) -> (i32, i32) {
    %c0_i32 = arith.constant 0 : i32
    %c0_i32_0 = arith.constant 0 : i32
    return %c0_i32, %arg0 : i32, i32
  }
}

</mosaic_0001>

<bundles_post_ra>
// kernel: mlp_policy_forward.1
= control target key start
LH: loop header
LB: loop body
LE: loop exit
PB: predicated region body
PF: predicated region fallthrough
CT: control target
= control target key end

     0   :  { %vm21_vm0 = vcmask 130048   ;;  %v12_v19 = vlaneseq  ;;  %v136_v24 = vmov 0.0   ;;  %vm119_vm3 = vcmask 64512   ;;  %s224_s1 = inlined_call_operand.vmem [shape: f32[168,128], index: 1, kind: input, shape index: {}]   ;;  %s225_s0 = inlined_call_operand.vmem [shape: f32[8,16], index: 0, kind: input, shape index: {}]   ;;  %s226_s2 = inlined_call_operand.vmem [shape: f32[16,8], index: 2, kind: output, shape index: {}]  }
   0x1   :  { %v18_v0 = vld [vmem:[%s224_s1 + $0x8] sm:$0xff]  ;;  %v17_v1 = vld [vmem:[%s224_s1] sm:$0xff]  ;;  %v60_v5 = vld [vmem:[%s224_s1 + $0x78] sm:$0xff] }
   0x2   :  { %39 = vmatpush.msra.mxu0 %v18_v0  ;;  %v11_v2 = vld [vmem:[%s225_s0] sm:$0xff]  ;;  %v62_v3 = vld [vmem:[%s224_s1 + $0x88] sm:$0xff]  ;;  %v59_v6 = vld [vmem:[%s224_s1 + $0x70] sm:$0xff]  ;;  %v13_v22 = vand.u32 127, %v12_v19  ;;  %v111_v34 = vshrl.u32 %v12_v19, 7 }
   0x3   :  { %v61_v4 = vld [vmem:[%s224_s1 + $0x80] sm:$0xff]  ;;  %63 = vmatpush.msra.mxu1 %v62_v3  ;;  %v58_v7 = vld [vmem:[%s224_s1 + $0x68] sm:$0xff]  ;;  %v56_v9 = vld [vmem:[%s224_s1 + $0x58] sm:$0xff] }
   0x4   :  { %40 = vmatpush.msra.mxu0 %v17_v1  ;;  %v57_v8 = vld [vmem:[%s224_s1 + $0x60] sm:$0xff]  ;;  %v55_v10 = vld [vmem:[%s224_s1 + $0x50] sm:$0xff]  ;;  %v54_v11 = vld [vmem:[%s224_s1 + $0x48] sm:$0xff]  ;;  %vm14_vm1 = vcmp.eq.s32.totalorder %v13_v22, 127  ;;  %vm113_vm2 = vcmp.lt.s32.totalorder %v111_v34, 4 }
   0x5   :  { %127 = vmatmul.msk.f32.vlgmr.msra.gmra.mxu0 %vm21_vm0, %v11_v2  ;;  %64 = vmatpush.msra.mxu1 %v61_v4  ;;  %v53_v12 = vld [vmem:[%s224_s1 + $0x40] sm:$0xff]  ;;  %v52_v13 = vld [vmem:[%s224_s1 + $0x38] sm:$0xff]  ;;  %v51_v14 = vld [vmem:[%s224_s1 + $0x30] sm:$0xff]  ;;  %v126_v25 = vsel %vm14_vm1, 1.0, %v136_v24 }
   0x6   :  { %v50_v15 = vld [vmem:[%s224_s1 + $0x28] sm:$0xff]  ;;  %v49_v16 = vld [vmem:[%s224_s1 + $0x20] sm:$0xff]  ;;  %v48_v17 = vld [vmem:[%s224_s1 + $0x18] sm:$0xff] }
   0x7   :  { %65 = vmatpush.msra.mxu1 %v60_v5  ;;  %v47_v18 = vld [vmem:[%s224_s1 + $0x10] sm:$0xff]  ;;  %v129_v20 = vld [vmem:[%s224_s1 + $0xa0] ss:$0 sm:$0xff]  ;;  %v85_v32 = vld [vmem:[%s224_s1 + $0x98] sm:$0xff] }
   0x8   :  { %v84_v31 = vld [vmem:[%s224_s1 + $0x90] sm:$0xff] }
   0x9   :  { %66 = vmatpush.msra.mxu1 %v59_v6 }
   0xb   :  { %67 = vmatpush.msra.mxu1 %v58_v7 }
   0xd   :  { %68 = vmatpush.msra.mxu1 %v57_v8 }
   0xf   :  { %69 = vmatpush.msra.mxu1 %v56_v9 }
  0x11   :  { %70 = vmatpush.msra.mxu1 %v55_v10 }
  0x13   :  { %71 = vmatpush.msra.mxu1 %v54_v11 }
  0x15   :  { %72 = vmatpush.msra.mxu1 %v53_v12 }
  0x17   :  { %73 = vmatpush.msra.mxu1 %v52_v13 }
  0x19   :  { %74 = vmatpush.msra.mxu1 %v51_v14 }
  0x1b   :  { %75 = vmatpush.msra.mxu1 %v50_v15 }
  0x1d   :  { %76 = vmatpush.msra.mxu1 %v49_v16 }
  0x1f   :  { %77 = vmatpush.msra.mxu1 %v48_v17 }
  0x21   :  { %78 = vmatpush.msra.mxu1 %v47_v18 }
  0x82   :  { %v42_v21 = vpop.f32.mrf.mxu0 }
  0x83   :  { %v43_v23 = vadd.f32 %v129_v20, %v42_v21 }
  0x85   :  { %130 = vtanh.f32 %v43_v23 }
  0x8b   :  { %v131_v26 = vpop.eup %130 }
  0x8c   :  { %v46_v27 = vadd.f32 %v131_v26, %v126_v25 }
  0x8e   :  { %79 = vmatmul.f32.vlgmr.msra.gmra.mxu1 %v46_v27 }
 0x10b   :  { %v80_v28 = vpop.f32.mrf.mxu1 }
 0x10c   :  { %132 = vtanh.f32 %v80_v28 }
 0x112   :  { %v133_v29 = vpop.eup %132 }
 0x113   :  { %v86_v30 = vadd.f32 %v133_v29, %v126_v25 }
 0x115   :  { %102 = vmatpush.xpose.msra.mxu2 %v86_v30 }
 0x118   :  { %103 = vmatmul.f32.vlgmr.msra.gmra.mxu2 %v84_v31 }
 0x120   :  { %106 = vmatmul.f32.gmra.mxu2 %v85_v32 }
 0x19b   :  { %v104_v33 = vpop.f32.mrf.mxu2 }
 0x19c   :  { %134 = vtanh.f32 %v104_v33 }
 0x1a2   :  { %v135_v35 = vpop.eup %134 }
 0x1a3   :  { %v117_v36 = vsel %vm113_vm2, %v135_v35, %v104_v33  ;;  %v107_v37 = vpop.f32.mrf.mxu2 }
 0x1a4   :  { %120 = vst.msk [vmem:[%s226_s2] sm:$0xff] %vm119_vm3, %v117_v36 }
 0x1a5   :  { %121 = vst.msk [vmem:[%s226_s2 + $0x8] sm:$0xff] %vm119_vm3, %v107_v37 }

</bundles_post_ra>
